<compile_context>
chip_gen: v7x
topology: tpu7x:2x2x1
jax: 0.10.0
libtpu: 0.0.40
codegen_flags: <defaults>
</compile_context>

<pallas_src>
import jax
import jax.numpy as jnp
from jax import lax
from jax.experimental import pallas as pl
from jax.experimental.pallas import tpu as pltpu


def _seg_fusion_kernel(x_ref, w_ref, b_ref, prob_ref, cls_ref):
    """One (batch, pixel-tile) grid step.

    x_ref   : (1, C, TP) input activations (native NCHW; pixels on lanes)
    w_ref   : (K, C)     1x1-conv weight (same dtype as x)
    b_ref   : (K, 1)     1x1-conv bias (float32)
    prob_ref: (1, 1, TP) max softmax probability (float32)
    cls_ref : (1, 1, TP) argmax class (int32)
    """
    x = x_ref[0]                      # (C, TP)
    w = w_ref[...]                    # (K, C)

    # 1x1 conv == per-pixel channel contraction on the MXU, f32 accumulate.
    logits = jnp.dot(w, x, preferred_element_type=jnp.float32)    # (K, TP)
    logits = logits + b_ref[...]                                  # bias bcast over lanes

    # MeanFusion with a single scale:
    #   buffer == softmax(logits); output() == (max, argmax) over classes.
    # Identities used (exact in fp for the max element since exp(0)==1):
    #   max(softmax(l))    = 1 / sum(exp(l - max(l)))
    #   argmax(softmax(l)) = argmax(l)
    m = jnp.max(logits, axis=0, keepdims=True)                    # (1, TP)
    s = jnp.sum(jnp.exp(logits - m), axis=0, keepdims=True)       # (1, TP)
    max_p = 1.0 / s                                               # exact divide

    k = logits.shape[0]
    idx = lax.broadcasted_iota(jnp.int32, logits.shape, 0)
    cand = jnp.where(logits == m, idx, k)                         # first-index tie-break
    cls = jnp.min(cand, axis=0, keepdims=True)                    # (1, TP) int32

    prob_ref[0] = max_p
    cls_ref[0] = cls


def segmentation_forward(x_nchw, cls_weight, cls_bias, *, tile_pix=2048):
    """Forward pass of TestSegmentationModule (default args).

    x_nchw:     (B, C, H, W)   activations (any float dtype; kept as-is through DMA)
    cls_weight: (classes, C)   1x1-conv weight (or (classes, C, 1, 1))
    cls_bias:   (classes,)

    Returns (probs, cls): (B, H, W) float32 and (B, H, W) int32.
    (PyTorch's argmax dtype is int64; int32 is used here.)
    """
    B, C, H, W = x_nchw.shape
    K = cls_weight.shape[0]
    HW = H * W

    tile_pix = min(tile_pix, HW)
    assert HW % tile_pix == 0, "H*W must be a multiple of tile_pix (pad spatial dims)"

    # Pure metadata reshapes only — no transpose, no dtype cast (no extra HBM pass).
    x3d = x_nchw.reshape(B, C, HW)
    w = cls_weight.reshape(K, C).astype(x_nchw.dtype)   # tiny; feeds the MXU in x's dtype
    b = cls_bias.reshape(K, 1).astype(jnp.float32)      # bias added in f32

    grid = (B, HW // tile_pix)

    probs, cls = pl.pallas_call(
        _seg_fusion_kernel,
        out_shape=(
            jax.ShapeDtypeStruct((B, 1, HW), jnp.float32),
            jax.ShapeDtypeStruct((B, 1, HW), jnp.int32),
        ),
        grid_spec=pltpu.PrefetchScalarGridSpec(
            num_scalar_prefetch=0,
            grid=grid,
            in_specs=[
                pl.BlockSpec((1, C, tile_pix), lambda bi, pi: (bi, 0, pi)),  # pixel tile
                pl.BlockSpec((K, C), lambda bi, pi: (0, 0)),                 # resident weight
                pl.BlockSpec((K, 1), lambda bi, pi: (0, 0)),                 # resident bias
            ],
            out_specs=[
                pl.BlockSpec((1, 1, tile_pix), lambda bi, pi: (bi, 0, pi)),  # lane-dense
                pl.BlockSpec((1, 1, tile_pix), lambda bi, pi: (bi, 0, pi)),  # lane-dense
            ],
        ),
        compiler_params=pltpu.CompilerParams(
            dimension_semantics=("parallel", "parallel")),
    )(x3d, w, b)

    return probs.reshape(B, H, W), cls.reshape(B, H, W)


def _reference_forward(x_nchw, cls_weight, cls_bias):
    """Plain-JAX reference mirroring the PyTorch semantics (default args)."""
    logits = jnp.einsum("bchw,kc->bkhw", x_nchw.astype(jnp.float32),
                        cls_weight.astype(jnp.float32))
    logits = logits + cls_bias.astype(jnp.float32)[None, :, None, None]
    probs = jax.nn.softmax(logits, axis=1)          # MeanFusion buffer (1 scale)
    return jnp.max(probs, axis=1), jnp.argmax(probs, axis=1).astype(jnp.int32)


if __name__ == "__main__":
    # Small shapes consistent with the module's forward (identity body/head).
    B, C, H, W = 2, 4, 16, 16
    CLASSES = 8

    key = jax.random.PRNGKey(0)
    kx, kw, kb = jax.random.split(key, 3)
    x = jax.random.normal(kx, (B, C, H, W), dtype=jnp.float32)
    cls_w = jax.random.normal(kw, (CLASSES, C), dtype=jnp.float32) * 0.5
    cls_b = jax.random.normal(kb, (CLASSES,), dtype=jnp.float32) * 0.1

    probs, cls = segmentation_forward(x, cls_w, cls_b)
    probs = jax.block_until_ready(probs)
    cls = jax.block_until_ready(cls)

    ref_probs, ref_cls = _reference_forward(x, cls_w, cls_b)
    assert probs.shape == (B, H, W) and cls.shape == (B, H, W)
    assert jnp.allclose(probs, ref_probs, atol=1e-5, rtol=1e-5)
    assert jnp.array_equal(cls, ref_cls)

    print("KERNEL_OK")
</pallas_src>

<mosaic_0001>
module attributes {stable_mosaic.version = 11 : i64} {
  func.func @_seg_fusion_kernel(%arg0: i32, %arg1: i32, %arg2: memref<1x4x256xf32, #tpu.memory_space<vmem>>, %arg3: memref<8x4xf32, #tpu.memory_space<vmem>>, %arg4: memref<8x1xf32, #tpu.memory_space<vmem>>, %arg5: memref<1x1x256xf32, #tpu.memory_space<vmem>>, %arg6: memref<1x1x256xi32, #tpu.memory_space<vmem>>) attributes {dimension_semantics = [#tpu.dimension_semantics<parallel>, #tpu.dimension_semantics<parallel>], iteration_bounds = array<i64: 2, 1>, scalar_prefetch = 0 : i64, scratch_operands = 0 : i64, tpu.core_type = #tpu.core_type<tc>, window_params = [{transform_indices = @transform_0, window_bounds = array<i64: 1, 4, 256>}, {pipeline_mode = #tpu.pipeline_mode<synchronous>, transform_indices = @transform_1, window_bounds = array<i64: 8, 4>}, {pipeline_mode = #tpu.pipeline_mode<synchronous>, transform_indices = @transform_2, window_bounds = array<i64: 8, 1>}, {transform_indices = @transform_3, window_bounds = array<i64: 1, 1, 256>}, {transform_indices = @transform_4, window_bounds = array<i64: 1, 1, 256>}]} {
    %c0 = arith.constant 0 : index
    %c0_0 = arith.constant 0 : index
    %c0_1 = arith.constant 0 : index
    %0 = vector.load %arg2[%c0, %c0_0, %c0_1] : memref<1x4x256xf32, #tpu.memory_space<vmem>>, vector<1x4x256xf32>
    %1 = vector.shape_cast %0 : vector<1x4x256xf32> to vector<4x256xf32>
    %c0_2 = arith.constant 0 : index
    %c0_3 = arith.constant 0 : index
    %2 = vector.load %arg3[%c0_2, %c0_3] : memref<8x4xf32, #tpu.memory_space<vmem>>, vector<8x4xf32>
    %cst = arith.constant dense<0.000000e+00> : vector<8x256xf32>
    %3 = tpu.matmul %2, %1, %cst {dimension_numbers = #tpu.dot_dimension_numbers<[1], [0], [0], [1], [0, 0, 1, 1], [], []>} : vector<8x4xf32>, vector<4x256xf32>, vector<8x256xf32> -> vector<8x256xf32>
    %c0_4 = arith.constant 0 : index
    %c0_5 = arith.constant 0 : index
    %4 = vector.load %arg4[%c0_4, %c0_5] : memref<8x1xf32, #tpu.memory_space<vmem>>, vector<8x1xf32>
    %5 = vector.broadcast %4 : vector<8x1xf32> to vector<8x256xf32>
    %6 = arith.addf %3, %5 : vector<8x256xf32>
    %cst_6 = arith.constant dense<0xFF800000> : vector<256xf32>
    %7 = vector.multi_reduction <maximumf>, %6, %cst_6 [0] : vector<8x256xf32> to vector<256xf32>
    %8 = vector.shape_cast %7 : vector<256xf32> to vector<1x256xf32>
    %9 = vector.broadcast %8 : vector<1x256xf32> to vector<8x256xf32>
    %10 = arith.subf %6, %9 : vector<8x256xf32>
    %11 = math.exp %10 : vector<8x256xf32>
    %cst_7 = arith.constant dense<0.000000e+00> : vector<256xf32>
    %12 = vector.multi_reduction <add>, %11, %cst_7 [0] : vector<8x256xf32> to vector<256xf32>
    %13 = vector.shape_cast %12 : vector<256xf32> to vector<1x256xf32>
    %cst_8 = arith.constant 1.000000e+00 : f32
    %14 = vector.broadcast %cst_8 : f32 to vector<1x256xf32>
    %15 = arith.divf %14, %13 : vector<1x256xf32>
    %16 = tpu.iota {dimensions = array<i32: 0>} : vector<8x256xi32>
    %17 = vector.broadcast %8 : vector<1x256xf32> to vector<8x256xf32>
    %18 = arith.cmpf oeq, %6, %17 : vector<8x256xf32>
    %c8_i32 = arith.constant 8 : i32
    %19 = vector.broadcast %c8_i32 : i32 to vector<8x256xi32>
    %20 = arith.select %18, %16, %19 : vector<8x256xi1>, vector<8x256xi32>
    %cst_9 = arith.constant dense<2147483647> : vector<256xi32>
    %21 = vector.multi_reduction <minsi>, %20, %cst_9 [0] : vector<8x256xi32> to vector<256xi32>
    %22 = vector.shape_cast %21 : vector<256xi32> to vector<1x256xi32>
    %c0_10 = arith.constant 0 : index
    %c0_11 = arith.constant 0 : index
    %c0_12 = arith.constant 0 : index
    %23 = vector.load %arg5[%c0_10, %c0_11, %c0_12] : memref<1x1x256xf32, #tpu.memory_space<vmem>>, vector<1x1x256xf32>
    %24 = vector.shape_cast %23 : vector<1x1x256xf32> to vector<1x256xf32>
    %25 = vector.shape_cast %15 : vector<1x256xf32> to vector<1x1x256xf32>
    tpu.vector_store %arg5[%c0_10, %c0_11, %c0_12], %25 {strides = array<i32>} : memref<1x1x256xf32, #tpu.memory_space<vmem>>, vector<1x1x256xf32>,
    %c0_13 = arith.constant 0 : index
    %c0_14 = arith.constant 0 : index
    %c0_15 = arith.constant 0 : index
    %26 = vector.load %arg6[%c0_13, %c0_14, %c0_15] : memref<1x1x256xi32, #tpu.memory_space<vmem>>, vector<1x1x256xi32>
    %27 = vector.shape_cast %26 : vector<1x1x256xi32> to vector<1x256xi32>
    %28 = vector.shape_cast %22 : vector<1x256xi32> to vector<1x1x256xi32>
    tpu.vector_store %arg6[%c0_13, %c0_14, %c0_15], %28 {strides = array<i32>} : memref<1x1x256xi32, #tpu.memory_space<vmem>>, vector<1x1x256xi32>,
    return
  }
  func.func @transform_0(%arg0: i32, %arg1: i32) -> (i32, i32, i32) {
    %c0_i32 = arith.constant 0 : i32
    %c0_i32_0 = arith.constant 0 : i32
    return %arg0, %c0_i32, %arg1 : i32, i32, i32
  }
  func.func @transform_1(%arg0: i32, %arg1: i32) -> (i32, i32) {
    %c0_i32 = arith.constant 0 : i32
    %c0_i32_0 = arith.constant 0 : i32
    %c0_i32_1 = arith.constant 0 : i32
    return %c0_i32, %c0_i32_0 : i32, i32
  }
  func.func @transform_2(%arg0: i32, %arg1: i32) -> (i32, i32) {
    %c0_i32 = arith.constant 0 : i32
    %c0_i32_0 = arith.constant 0 : i32
    %c0_i32_1 = arith.constant 0 : i32
    return %c0_i32, %c0_i32_0 : i32, i32
  }
  func.func @transform_3(%arg0: i32, %arg1: i32) -> (i32, i32, i32) {
    %c0_i32 = arith.constant 0 : i32
    %c0_i32_0 = arith.constant 0 : i32
    return %arg0, %c0_i32, %arg1 : i32, i32, i32
  }
  func.func @transform_4(%arg0: i32, %arg1: i32) -> (i32, i32, i32) {
    %c0_i32 = arith.constant 0 : i32
    %c0_i32_0 = arith.constant 0 : i32
    return %arg0, %c0_i32, %arg1 : i32, i32, i32
  }
}

</mosaic_0001>

<bundles_post_ra>
// kernel: tpu_custom_call.1
= control target key start
LH: loop header
LB: loop body
LE: loop exit
PB: predicated region body
PF: predicated region fallthrough
CT: control target
= control target key end

     0   :  { %10 = vsyncpa [#allocation3], 0  ;;  %s988_s0 = inlined_call_operand.vmem [shape: f32[2,4,256], index: 0, kind: input, shape index: {}]   ;;  %s989_s1 = inlined_call_operand.vmem [shape: f32[8,4], index: 1, kind: input, shape index: {}]   ;;  %s990_s2 = inlined_call_operand.vmem [shape: f32[8,1], index: 2, kind: input, shape index: {}]   ;;  %s991_s3 = inlined_call_operand.hbm [shape: f32[2,1,256], index: 3, kind: output, shape index: {0}]   ;;  %s992_s4 = inlined_call_operand.hbm [shape: s32[2,1,256], index: 4, kind: output, shape index: {1}]  }
   0x1   :  { %12 = vsyncpa [#allocation3 + $0x1], 0 }
   0x2   :  { %13 = vsyncpa [#allocation5], 0 }
   0x3   :  { %15 = vsyncpa [#allocation5 + $0x1], 0  ;;  %s815_s15 = smov 0   ;;  %s817_s16 = smov 0  }
   0x4   :  { %s819_s17 = smov 0   ;;  %s821_s18 = smov 0  }
   0x5   :  { %s823_s19 = smov 0   ;;  %s825_s20 = smov 0  }
   0x6 LB: > { %s577_s21 = sadd.s32 4294967295, %s783_s20   ;;  %s578_s22 = sadd.s32 4294967294, %s783_s20   ;;  %s783_s20 = sphi %s825_s20, %s21_s20   ;;  %s779_s19 = sphi %s823_s19, %s1001_s19   ;;  %s775_s18 = sphi %s821_s18, %s1000_s18   ;;  %s771_s17 = sphi %s819_s17, %s999_s17   ;;  %s767_s16 = sphi %s817_s16, %s998_s16   ;;  %s763_s15 = sphi %s815_s15, %s997_s15  }
   0x7   : > { %s33_s23 = sadd.s32 1, %s779_s19  ;;  %s112_s24 = sadd.s32 1, %s771_s17 }
   0x8   : > { %p35_p0 = scmp.ge.s32.totalorder %s33_s23, 2  ;;  %p122_p1 = scmp.ne.s32.totalorder %s771_s17, %s767_s16 }
   0x9   : > { %p123_p2 = scmp.eq.s32.totalorder %s577_s21, 1  ;;  %p128_p3 = scmp.ne.s32.totalorder %s767_s16, %s763_s15 }
   0xa   : > { %s1003_s23 = smov (%p35_p0, %s33_s23), 0  ;;  %p129_p5 = scmp.eq.s32.totalorder %s578_s22, 1 }
   0xb   : > { %p855_p4 = por %p123_p2, %p122_p1  ;;  %s107_s26 = ssub.s32 %s779_s19, %s1003_s23 }
   0xc   : > { %p581_p6 = scmp.ge.s32.totalorder %s783_s20, 1  ;;  %p110_p7 = scmp.eq.s32.totalorder %s107_s26, 0 }
   0xd   : > { %p862_p8 = por %p129_p5, %p128_p3  ;;  %p194_p9 = scmp.lt.s32.totalorder %s783_s20, 3 }
   0xe   : > { %s868_s28 = scalar_select %p110_p7, %s771_s17, %s112_s24  }
   0xf   : > { %p195_p10 = pnand %p581_p6, %p194_p9 }
  0x10   : > { %p230_p11 = scmp.lt.s32.totalorder (!%p195_p10), %s775_s18, 1  ;;  %v785_v0 = vmov (!%p195_p10), 0.0   ;;  %v786_v1 = vmov (!%p195_p10), 0   ;;  %v243_v2 = vld [vmem:[%s990_s2] sm:$0xff] (!%p195_p10)  ;;  %vm255_vm0 = vcmask (!%p195_p10), 1043456   ;;  %vm251_vm1 = vcmask (!%p195_p10), 31744  }
  0x11   : > { %198 = sbr.rel (%p195_p10) target bundleno = 330 (0x14a), region = 32  ;;  %324 = vmatprep.mubr.f32.mxu0 (!%p195_p10), %v785_v0  ;;  %663 = vset.pattern.permute.xlu0 (!%p195_p10), %v786_v1  ;;  %v242_v5 = vld [vmem:[%s989_s1] sm:$0xff] (!%p195_p10)  ;;  %v365_v17 = vlaneseq (!%p195_p10)  ;;  %v787_v34 = vmov (!%p195_p10), 1966171168   ;;  %s882_s12 = sand.u32 (!%p195_p10), 1, %s767_s16  }
  0x12   : > { %246 = vperm.xlu0 (!%p195_p10), %663, %v243_v2   ;;  %v393_v35 = vunpack.c.l.s4 (!%p195_p10), %v787_v34  ;;  %s582_s13 = sshll.u32 (!%p195_p10), %s882_s12, 1  ;;  %s598_s14 = sshll.u32 (!%p195_p10), %s775_s18, 5 }
  0x13   : > { %v366_v22 = vshrl.u32 (!%p195_p10), %v365_v17, 7  ;;  %s228_s21 = scalar_lea.vmem (!%p195_p10), [#allocation4], %s582_s13  ;;  %vm891_vm10 = vcmp.lt.s32.totalorder (!%p195_p10), %v365_v17, 256  ;;  %s901_s29 = scalar_lea.hbm (!%p195_p10), %s992_s4, %s598_s14 }
  0x14   : > { %v394_v39 = vunpack.c.0.s8 (!%p195_p10), %v393_v35  ;;  %s466_s22 = sshll.u32 (!%p195_p10), %s228_s21, 4  ;;  %s434_s30 = scalar_lea.sflag (!%p195_p10), [#allocation5], %s882_s12  ;;  %s903_s22 = int_to_ptr.vmem [resolvable:$true] %s466_s22 }
  0x16   : > { %v885_v44 = vsub.s32 (!%p195_p10), %v394_v39, %v366_v22 }
  0x18   : > { %s231_s5 = scalar_select %p230_p11, %s775_s18, 1 }
  0x1a   : > { %s597_s6 = sshll.u32 %s231_s5, 3  ;;  %s673_s5 = scalar_lea.vmem %s903_s22, 32 }
  0x1b   : > { %s237_s9 = scalar_lea.vmem %s988_s0, %s597_s6  ;;  %p674_p12 = scmp.ne.s32.totalorder %s903_s22, %s673_s5 }
  0x1c   : > { %v241_v3 = vld [vmem:[%s237_s9] sm:$0xff]  ;;  %s788_s6 = smov [#allocation4]  }
  0x1d   : > { %v250_v4 = vcombine.high %v241_v3, %v241_v3  ;;  %p675_p13 = pnand %p674_p12, %p855_p4  ;;  %s677_s7 = sshll.u32 %s788_s6, 4  ;;  %s678_s7 = int_to_ptr.vmem [resolvable:$false] %s677_s7 }
  0x1e   : > { %s679_s8 = scalar_lea.vmem %s678_s7, 64  ;;  %p680_p1 = scmp.lt.s32.totalorder %s903_s22, %s678_s7 }
  0x1f   : > { %586 = vmatprep.subr.msk.mxu0 %vm255_vm0, %v250_v4  ;;  %p676_p0 = pneg %p675_p13  ;;  %p681_p2 = scmp.lt.s32.totalorder %s679_s8, %s673_s5 }
  0x20   : > { %587 = vmatpush1.msk.msra.mxu0 %vm255_vm0, %v241_v3 }
  0x21   : > { %588 = vmatmul.mubr.msk.f32.vlgmr.msra.gmra.mrb[0].mxu0 %vm251_vm1, %v242_v5  ;;  %p682_p3 = por %p681_p2, %p680_p1 }
  0x23   : > { %p683_p5 = pnand %p682_p3, %p676_p0 }
  0x91   : > { %v247_v6 = vpop.permute.xlu0 %246 }
  0xf4   : > { %v326_v7 = vpop.f32.mrb[0].mxu0 }
  0xf5   : > { %v327_v8 = vadd.f32 %v326_v7, %v247_v6  ;;  %v328_v9 = vpop.f32.mrb[1].mxu0 }
  0xf6   : > { %v329_v10 = vadd.f32 %v328_v9, %v247_v6 }
  0xf7   : > { %v331_v11 = vrot.slane %v327_v8, 4 }
  0xf8   : > { %v337_v12 = vrot.slane %v329_v10, 4 }
  0xf9   : > { %v332_v13 = vmax.f32 %v327_v8, %v331_v11 }
  0xfa   : > { %v338_v14 = vmax.f32 %v329_v10, %v337_v12 }
  0xfb   : > { %v333_v15 = vrot.slane %v332_v13, 2 }
  0xfc   : > { %v339_v16 = vrot.slane %v338_v14, 2 }
  0xfd   : > { %v334_v18 = vmax.f32 %v332_v13, %v333_v15 }
  0xfe   : > { %v340_v19 = vmax.f32 %v338_v14, %v339_v16 }
  0xff   : > { %v335_v20 = vrot.slane %v334_v18, 1 }
 0x100   : > { %v341_v21 = vrot.slane %v340_v19, 1 }
 0x101   : > { %v336_v23 = vmax.f32 %v334_v18, %v335_v20 }
 0x102   : > { %v342_v24 = vmax.f32 %v340_v19, %v341_v21 }
 0x103   : > { %v343_v25 = vsub.f32 %v327_v8, %v336_v23  ;;  %vm367_vm2 = vcmp.eq.f32.partialorder %v327_v8, %v336_v23 }
 0x104   : > { %v344_v26 = vsub.f32 %v329_v10, %v342_v24  ;;  %vm368_vm3 = vcmp.eq.f32.partialorder %v329_v10, %v342_v24  ;;  %v369_v27 = vsel %vm367_vm2, %v366_v22, 8 }
 0x105   : > { %v345_v28 = vmul.f32 1.442695, %v343_v25  ;;  %v370_v29 = vsel %vm368_vm3, %v366_v22, 8  ;;  %v371_v30 = vrot.slane %v369_v27, 4 }
 0x106   : > { %v347_v31 = vmul.f32 1.442695, %v344_v26  ;;  %v380_v32 = vrot.slane %v370_v29, 4 }
 0x107   : > { %665 = vpow2.f32 %v345_v28  ;;  %vm372_vm4 = vcmp.lt.s32.totalorder %v369_v27, %v371_v30 }
 0x108   : > { %667 = vpow2.f32 %v347_v31  ;;  %v373_v33 = vsel %vm372_vm4, %v369_v27, %v371_v30  ;;  %vm381_vm5 = vcmp.lt.s32.totalorder %v370_v29, %v380_v32 }
 0x109   : > { %v374_v36 = vrot.slane %v373_v33, 2  ;;  %v382_v37 = vsel %vm381_vm5, %v370_v29, %v380_v32 }
 0x10a   : > { %v383_v38 = vrot.slane %v382_v37, 2 }
 0x10b   : > { %vm375_vm6 = vcmp.lt.s32.totalorder %v373_v33, %v374_v36 }
 0x10c   : > { %v376_v40 = vsel %vm375_vm6, %v373_v33, %v374_v36  ;;  %vm384_vm7 = vcmp.lt.s32.totalorder %v382_v37, %v383_v38 }
 0x10d   : > { %v377_v41 = vrot.slane %v376_v40, 1  ;;  %v385_v42 = vsel %vm384_vm7, %v382_v37, %v383_v38 }
 0x10e   : > { %v386_v43 = vrot.slane %v385_v42, 1 }
 0x10f   : > { %vm378_vm8 = vcmp.lt.s32.totalorder %v376_v40, %v377_v41 }
 0x110   : > { %v379_v45 = vsel %vm378_vm8, %v376_v40, %v377_v41  ;;  %vm387_vm9 = vcmp.lt.s32.totalorder %v385_v42, %v386_v43 }
 0x111   : > { %v666_v46 = vpop.eup %665  ;;  %v388_v47 = vsel %vm387_vm9, %v385_v42, %v386_v43 }
 0x112   : > { %v668_v48 = vpop.eup %667  ;;  %v349_v49 = vrot.slane %v666_v46, 4  ;;  %v412_v50 = vcombine.low %v379_v45, %v388_v47 }
 0x113   : > { %v355_v51 = vrot.slane %v668_v48, 4 }
 0x114   : > { %v350_v52 = vadd.f32 %v666_v46, %v349_v49  ;;  %v419_v53 = vrot.slane %v412_v50, %v885_v44 }
 0x115   : > { %v356_v54 = vadd.f32 %v668_v48, %v355_v51 }
 0x116   : > { %v351_v56 = vrot.slane %v350_v52, 2  ;;  %v426_v57 = vrot.slane %v419_v53, %v885_v44 }
 0x117   : > { %v357_v58 = vrot.slane %v356_v54, 2 }
 0x118   : > { %v352_v59 = vadd.f32 %v351_v56, %v350_v52  ;;  %427 = vst.msk [vmem:[%s228_s21] sm:$0x3] %vm891_vm10, %v426_v57 }
 0x119   : > { %v358_v60 = vadd.f32 %v357_v58, %v356_v54 }
 0x11a   : > { %686 = shalt.err (!%p683_p5)
}
 0x11b   : > { %s687_s9 = scalar_lea.hbm %s901_s29, 32  ;;  %s691_s21 = scalar_lea.hbm %s992_s4, 64 }
 0x11c   : > { %p688_p6 = scmp.ne.s32.totalorder %s901_s29, %s687_s9  ;;  %p692_p10 = scmp.lt.u32.totalorder %s901_s29, %s992_s4 }
 0x11d   : > { %p693_p11 = scmp.lt.u32.totalorder %s691_s21, %s687_s9  ;;  %p695_p13 = scmp.lt.u32.totalorder %s687_s9, %s901_s29 }
 0x11e   : > { %p689_p7 = pnand %p688_p6, %p855_p4 }
 0x11f   : > { %p694_p12 = por %p693_p11, %p692_p10 }
 0x120   : > { %p690_p9 = pneg %p689_p7 }
 0x121   : > { %p696_p0 = por %p695_p13, %p694_p12 }
 0x123   : > { %p697_p1 = pnand %p696_p0, %p690_p9 }
 0x125   : > { %700 = shalt.err (!%p697_p1)
}
 0x126   : > { %601 = dma.vmem_to_hbm [thread:$0]  (%p855_p4), %s903_s22, 32, %s901_s29, %s434_s30   ;;  %v353_v61 = vrot.slane %v352_v59, 1  ;;  %v359_v62 = vrot.slane %v358_v60, 1 }
 0x127   : > { %s221_s5 = scalar_lea.vmem [#allocation2], %s582_s13  ;;  %s938_s30 = scalar_lea.hbm %s991_s3, %s598_s14 }
 0x128   : > { %v354_v63 = vadd.f32 %v353_v61, %v352_v59  ;;  %v360_v0 = vadd.f32 %v359_v62, %v358_v60  ;;  %s450_s6 = sshll.u32 %s221_s5, 4  ;;  %s429_s13 = scalar_lea.sflag [#allocation3], %s882_s12  ;;  %s940_s6 = int_to_ptr.vmem [resolvable:$true] %s450_s6 }
 0x129   : > { %s701_s7 = scalar_lea.vmem %s940_s6, 32  ;;  %s789_s18 = smov [#allocation2]  }
 0x12a   : > { %669 = vrcp.f32 %v354_v63  ;;  %p702_p2 = scmp.ne.s32.totalorder %s940_s6, %s701_s7  ;;  %s705_s8 = sshll.u32 %s789_s18, 4  ;;  %s706_s8 = int_to_ptr.vmem [resolvable:$false] %s705_s8 }
 0x12b   : > { %671 = vrcp.f32 %v360_v0  ;;  %s707_s9 = scalar_lea.vmem %s706_s8, 64  ;;  %p708_p6 = scmp.lt.s32.totalorder %s940_s6, %s706_s8 }
 0x12c   : > { %p703_p3 = pnand %p702_p2, %p855_p4  ;;  %p709_p7 = scmp.lt.s32.totalorder %s707_s9, %s701_s7 }
 0x12e   : > { %p704_p5 = pneg %p703_p3  ;;  %p710_p9 = por %p709_p7, %p708_p6 }
 0x130   : > { %p711_p10 = pnand %p710_p9, %p704_p5 }
 0x134   : > { %v670_v1 = vpop.eup %669 }
 0x135   : > { %v672_v2 = vpop.eup %671 }
 0x136   : > { %v391_v3 = vcombine.low %v670_v1, %v672_v2 }
 0x138   : > { %v398_v4 = vrot.slane %v391_v3, %v885_v44 }
 0x13a   : > { %v405_v5 = vrot.slane %v398_v4, %v885_v44 }
 0x13c   : > { %411 = vst.msk [vmem:[%s221_s5] sm:$0x3] %vm891_vm10, %v405_v5 }
 0x13d   : > { %714 = shalt.err (!%p711_p10)
}
 0x13e   : > { %s715_s12 = scalar_lea.hbm %s938_s30, 32  ;;  %s719_s11 = scalar_lea.hbm %s991_s3, 64 }
 0x13f   : > { %p716_p11 = scmp.ne.s32.totalorder %s938_s30, %s715_s12  ;;  %p720_p0 = scmp.lt.u32.totalorder %s938_s30, %s991_s3 }
 0x140   : > { %p721_p1 = scmp.lt.u32.totalorder %s719_s11, %s715_s12  ;;  %p723_p3 = scmp.lt.u32.totalorder %s715_s12, %s938_s30 }
 0x141   : > { %p717_p12 = pnand %p716_p11, %p855_p4 }
 0x142   : > { %p722_p2 = por %p721_p1, %p720_p0 }
 0x143   : > { %p718_p13 = pneg %p717_p12 }
 0x144   : > { %p724_p5 = por %p723_p3, %p722_p2 }
 0x146   : > { %p725_p6 = pnand %p724_p5, %p718_p13 }
 0x148   : > { %728 = shalt.err (!%p725_p6)
}
 0x149   : > { %600 = dma.vmem_to_hbm [thread:$0]  (%p855_p4), %s940_s6, 32, %s938_s30, %s429_s13  }
 0x14a PF: > { %p611_p7 = scmp.ge.s32.totalorder %s783_s20, 2  ;;  %s478_s26 = sand.u32 1, %s763_s15  }
 0x14b   : > { %s479_s5 = scalar_lea.sflag [#allocation3], %s478_s26 }
 0x14c   : > { %p605_p9 = pnand %p611_p7, %p862_p8 }
 0x14e   : > { %754 = dma.done.wait (!%p605_p9), %s479_s5, 32  }
 0x14f   : > { %756 = vsyncadd (!%p605_p9), %s479_s5, 4294967264  ;;  %s488_s22 = scalar_lea.sflag [#allocation5], %s478_s26 }
 0x150   : > { %758 = dma.done.wait (!%p605_p9), %s488_s22, 32  }
 0x151   : > { %760 = vsyncadd (!%p605_p9), %s488_s22, 4294967264  ;;  %s21_s20 = sadd.s32 1, %s783_s20   ;;  %s997_s15 = smov %s767_s16 }
 0x152   : > { %p18_p10 = scmp.ge.s32.totalorder %s21_s20, 4   ;;  %s998_s16 = smov %s771_s17 }
 0x153   : > { %s999_s17 = smov %s868_s28  ;;  %s1000_s18 = smov %s779_s19 }
 0x154   : > { %s1001_s19 = smov %s1003_s23  ;;  %20 = sbr.rel (!%p18_p10) target bundleno = 6 (0x6), region = 84 }
 0x15b   :  { %493 = vsyncpa [#allocation3], 1 }
 0x15c   :  { %495 = vsyncpa [#allocation3 + $0x1], 1 }
 0x15d   :  { %496 = vsyncpa [#allocation5], 1 }
 0x15e   :  { %498 = vsyncpa [#allocation5 + $0x1], 1 }

</bundles_post_ra>
